<compile_context>
chip_gen: v7x
topology: tpu7x:2x2x1
jax: 0.10.0
libtpu: 0.0.40
codegen_flags: <defaults>
</compile_context>

<pallas_src>
import functools

import jax
import jax.numpy as jnp
from jax import lax
from jax.experimental import pallas as pl
from jax.experimental.pallas import tpu as pltpu


# ---------------------------------------------------------------------------
# Kernels
# ---------------------------------------------------------------------------

def _noisy_dense_train_kernel(x_ref, wmu_ref, wsig_ref, eout_ref, ein_ref,
                              bmu_ref, bsig_ref, beps_ref, o_ref, acc_ref):
    """grid = (N_tiles, K_tiles); K (reduction) is the last / 'arbitrary' axis."""
    k = pl.program_id(1)

    @pl.when(k == 0)
    def _():
        acc_ref[...] = jnp.zeros_like(acc_ref)

    # Noisy weight tile: f32 elementwise on the VPU (rank-1 outer product
    # rebuilt from its factors), then bf16 only at the MXU input.
    w_eps = eout_ref[...] * ein_ref[...]                        # [TN, TK]
    w = wmu_ref[...] + wsig_ref[...] * w_eps                    # f32 [TN, TK]

    acc_ref[...] += lax.dot_general(
        x_ref[...].astype(jnp.bfloat16),                        # [B, TK]
        w.astype(jnp.bfloat16),                                 # [TN, TK]
        dimension_numbers=(((1,), (1,)), ((), ())),             # contract K
        preferred_element_type=jnp.float32)                     # [B, TN] f32

    @pl.when(k == pl.num_programs(1) - 1)
    def _():
        b = bmu_ref[...] + bsig_ref[...] * beps_ref[...]        # [1, TN]
        o_ref[...] = (acc_ref[...] + b).astype(o_ref.dtype)


def _noisy_dense_eval_kernel(x_ref, wmu_ref, bmu_ref, o_ref, acc_ref):
    k = pl.program_id(1)

    @pl.when(k == 0)
    def _():
        acc_ref[...] = jnp.zeros_like(acc_ref)

    acc_ref[...] += lax.dot_general(
        x_ref[...].astype(jnp.bfloat16),
        wmu_ref[...].astype(jnp.bfloat16),
        dimension_numbers=(((1,), (1,)), ((), ())),
        preferred_element_type=jnp.float32)

    @pl.when(k == pl.num_programs(1) - 1)
    def _():
        o_ref[...] = (acc_ref[...] + bmu_ref[...]).astype(o_ref.dtype)


# ---------------------------------------------------------------------------
# Wrapper
# ---------------------------------------------------------------------------

_MAX_TILE = 512          # 512x512 f32 weight tile = 1 MiB; safe for v7x 64 MiB VMEM


def _round_up(x, m):
    return (x + m - 1) // m * m


def _tiling(dim, max_tile=_MAX_TILE):
    padded = _round_up(dim, 128)          # lane-dense
    tile = min(padded, max_tile)          # multiple of 128 by construction
    padded = _round_up(padded, tile)
    return padded, tile


def _pad2(a, rows, cols):
    return jnp.zeros((rows, cols), a.dtype).at[:a.shape[0], :a.shape[1]].set(a)


@functools.partial(jax.jit, static_argnames=("training",))
def noisy_dense_forward(x, params, training=True):
    """x: [B, inp_dim] float32; params: dict from init_noisy_dense."""
    B, inp_dim = x.shape
    out_dim = params["weights_mu"].shape[0]

    Bp = _round_up(max(B, 8), 8)
    Kp, TK = _tiling(inp_dim)
    Np, TN = _tiling(out_dim)
    grid = (Np // TN, Kp // TK)

    # Zero-pad everything (zero K-columns of x and zero N-rows of W contribute
    # nothing; padded output columns are sliced away below).
    xp = _pad2(x, Bp, Kp)
    wmu = _pad2(params["weights_mu"], Np, Kp)
    bmu = _pad2(params["biases_mu"].reshape(1, -1), 1, Np)

    out_shape = jax.ShapeDtypeStruct((Bp, Np), x.dtype)
    compiler_params = pltpu.CompilerParams(
        dimension_semantics=("parallel", "arbitrary"),
        vmem_limit_bytes=64 * 1024 * 1024,
    )

    n_weight_streams = 2 if training else 1
    cost = pl.CostEstimate(
        flops=2 * Bp * Kp * Np + (3 * Np * Kp if training else 0),
        transcendentals=0,
        bytes_accessed=4 * (n_weight_streams * Np * Kp + Bp * Kp + Bp * Np),
    )

    w_spec = pl.BlockSpec((TN, TK), lambda n, k: (n, k))
    x_spec = pl.BlockSpec((Bp, TK), lambda n, k: (0, k))
    b_spec = pl.BlockSpec((1, TN), lambda n, k: (0, n))
    o_spec = pl.BlockSpec((Bp, TN), lambda n, k: (0, n))
    scratch = [pltpu.VMEM((Bp, TN), jnp.float32)]

    if training:
        wsig = _pad2(params["weights_sigma"], Np, Kp)
        eout = _pad2(params["noise_e_out"].reshape(-1, 1), Np, 1)   # [Np, 1]
        ein = _pad2(params["noise_e_in"].reshape(1, -1), 1, Kp)     # [1, Kp]
        bsig = _pad2(params["biases_sigma"].reshape(1, -1), 1, Np)
        beps = _pad2(params["noise_e_out"].reshape(1, -1), 1, Np)   # biases_epsilon = e_out

        out = pl.pallas_call(
            _noisy_dense_train_kernel,
            out_shape=out_shape,
            grid_spec=pltpu.PrefetchScalarGridSpec(
                num_scalar_prefetch=0,
                grid=grid,
                in_specs=[
                    x_spec,
                    w_spec,                                         # weights_mu
                    w_spec,                                         # weights_sigma
                    pl.BlockSpec((TN, 1), lambda n, k: (n, 0)),     # e_out
                    pl.BlockSpec((1, TK), lambda n, k: (0, k)),     # e_in
                    b_spec,                                         # biases_mu
                    b_spec,                                         # biases_sigma
                    b_spec,                                         # biases_epsilon
                ],
                out_specs=o_spec,
                scratch_shapes=scratch,
            ),
            compiler_params=compiler_params,
            cost_estimate=cost,
        )(xp, wmu, wsig, eout, ein, bmu, bsig, beps)
    else:
        out = pl.pallas_call(
            _noisy_dense_eval_kernel,
            out_shape=out_shape,
            grid_spec=pltpu.PrefetchScalarGridSpec(
                num_scalar_prefetch=0,
                grid=grid,
                in_specs=[x_spec, w_spec, b_spec],
                out_specs=o_spec,
                scratch_shapes=scratch,
            ),
            compiler_params=compiler_params,
            cost_estimate=cost,
        )(xp, wmu, bmu)

    return out[:B, :out_dim]


# ---------------------------------------------------------------------------
# Parameter / noise initialization (NoisyDense.fill_params + reset_noise)
# ---------------------------------------------------------------------------

def init_noisy_dense(key, inp_dim, out_dim, std_init=0.5):
    k_wmu, k_bmu, k_ein, k_eout = jax.random.split(key, 4)
    mu_range = 1.0 / (inp_dim ** 0.5)

    weights_mu = jax.random.uniform(
        k_wmu, (out_dim, inp_dim), jnp.float32, -mu_range, mu_range)
    weights_sigma = jnp.full((out_dim, inp_dim),
                             std_init / (inp_dim ** 0.5), jnp.float32)
    biases_mu = jax.random.uniform(
        k_bmu, (out_dim,), jnp.float32, -mu_range, mu_range)
    biases_sigma = jnp.full((out_dim,),
                            std_init / (out_dim ** 0.5), jnp.float32)

    def _scale_noise(k, size):
        v = jax.random.normal(k, (size,), jnp.float32)
        return jnp.sign(v) * jnp.sqrt(jnp.abs(v))

    # weights_epsilon = outer(e_out, e_in) and biases_epsilon = e_out are
    # rank-1 / shared; only the factors are stored (never materialized).
    e_in = _scale_noise(k_ein, inp_dim)
    e_out = _scale_noise(k_eout, out_dim)

    return dict(
        weights_mu=weights_mu,
        weights_sigma=weights_sigma,
        biases_mu=biases_mu,
        biases_sigma=biases_sigma,
        noise_e_in=e_in,
        noise_e_out=e_out,
    )


# ---------------------------------------------------------------------------
# References
# ---------------------------------------------------------------------------

def _reference_forward_bf16(x, params, training=True):
    """Same math as the kernel: f32 noise construction, bf16 MXU operands,
    f32 accumulation."""
    w = params["weights_mu"]
    b = params["biases_mu"]
    if training:
        w_eps = jnp.outer(params["noise_e_out"], params["noise_e_in"])
        w = w + params["weights_sigma"] * w_eps
        b = b + params["biases_sigma"] * params["noise_e_out"]
    acc = lax.dot_general(
        x.astype(jnp.bfloat16), w.astype(jnp.bfloat16),
        dimension_numbers=(((1,), (1,)), ((), ())),
        preferred_element_type=jnp.float32)
    return acc + b


def _reference_forward_f32(x, params, training=True):
    w = params["weights_mu"]
    b = params["biases_mu"]
    if training:
        w = w + params["weights_sigma"] * jnp.outer(
            params["noise_e_out"], params["noise_e_in"])
        b = b + params["biases_sigma"] * params["noise_e_out"]
    return x @ w.T + b


# ---------------------------------------------------------------------------
# Demo / self-check
# ---------------------------------------------------------------------------

if __name__ == "__main__":
    inp_dim, out_dim, batch = 32, 16, 8
    key = jax.random.PRNGKey(0)
    k_params, k_x = jax.random.split(key)

    params = init_noisy_dense(k_params, inp_dim, out_dim, std_init=0.5)
    x = jax.random.normal(k_x, (batch, inp_dim), jnp.float32)

    # Training (noisy) path.
    out = jax.block_until_ready(noisy_dense_forward(x, params, training=True))
    assert out.shape == (batch, out_dim)
    ref_bf16 = _reference_forward_bf16(x, params, training=True)
    ref_f32 = _reference_forward_f32(x, params, training=True)
    assert jnp.allclose(out, ref_bf16, atol=1e-3, rtol=1e-3), "mismatch vs bf16 reference"
    assert jnp.allclose(out, ref_f32, atol=5e-2, rtol=5e-2), "mismatch vs f32 reference"

    # Eval (no-noise) path.
    out_eval = jax.block_until_ready(noisy_dense_forward(x, params, training=False))
    assert jnp.allclose(out_eval, _reference_forward_bf16(x, params, training=False),
                        atol=1e-3, rtol=1e-3)
    assert jnp.allclose(out_eval, _reference_forward_f32(x, params, training=False),
                        atol=5e-2, rtol=5e-2)

    # TODO(synk): batch (B) is kept as a single un-tiled block; for very large
    # batches a third grid axis over B would be needed.
    print("KERNEL_OK")
</pallas_src>

<mosaic_0001>
module attributes {stable_mosaic.version = 11 : i64} {
  func.func @_noisy_dense_train_kernel(%arg0: i32, %arg1: i32, %arg2: memref<8x128xf32, #tpu.memory_space<vmem>>, %arg3: memref<128x128xf32, #tpu.memory_space<vmem>>, %arg4: memref<128x128xf32, #tpu.memory_space<vmem>>, %arg5: memref<128x1xf32, #tpu.memory_space<vmem>>, %arg6: memref<1x128xf32, #tpu.memory_space<vmem>>, %arg7: memref<1x128xf32, #tpu.memory_space<vmem>>, %arg8: memref<1x128xf32, #tpu.memory_space<vmem>>, %arg9: memref<1x128xf32, #tpu.memory_space<vmem>>, %arg10: memref<8x128xf32, #tpu.memory_space<vmem>>, %arg11: memref<8x128xf32, #tpu.memory_space<vmem>>) attributes {dimension_semantics = [#tpu.dimension_semantics<parallel>, #tpu.dimension_semantics<arbitrary>], iteration_bounds = array<i64: 1, 1>, scalar_prefetch = 0 : i64, scratch_operands = 1 : i64, tpu.core_type = #tpu.core_type<tc>, window_params = [{transform_indices = @transform_0, window_bounds = array<i64: 8, 128>}, {transform_indices = @transform_1, window_bounds = array<i64: 128, 128>}, {transform_indices = @transform_2, window_bounds = array<i64: 128, 128>}, {transform_indices = @transform_3, window_bounds = array<i64: 128, 1>}, {transform_indices = @transform_4, window_bounds = array<i64: 1, 128>}, {transform_indices = @transform_5, window_bounds = array<i64: 1, 128>}, {transform_indices = @transform_6, window_bounds = array<i64: 1, 128>}, {transform_indices = @transform_7, window_bounds = array<i64: 1, 128>}, {transform_indices = @transform_8, window_bounds = array<i64: 8, 128>}]} {
    %c0_i32 = arith.constant 0 : i32
    %0 = arith.cmpi eq, %arg1, %c0_i32 : i32
    %1 = arith.extui %0 : i1 to i32
    %c0_i32_0 = arith.constant 0 : i32
    %2 = arith.cmpi ne, %1, %c0_i32_0 : i32
    scf.if %2 {
      %cst_16 = arith.constant 0.000000e+00 : f32
      %22 = vector.broadcast %cst_16 : f32 to vector<8x128xf32>
      %c0_17 = arith.constant 0 : index
      %c0_18 = arith.constant 0 : index
      %23 = vector.load %arg11[%c0_17, %c0_18] : memref<8x128xf32, #tpu.memory_space<vmem>>, vector<8x128xf32>
      tpu.vector_store %arg11[%c0_17, %c0_18], %22 {strides = array<i32>} : memref<8x128xf32, #tpu.memory_space<vmem>>, vector<8x128xf32>,
    } else {
    }
    %c0 = arith.constant 0 : index
    %c0_1 = arith.constant 0 : index
    %3 = vector.load %arg5[%c0, %c0_1] : memref<128x1xf32, #tpu.memory_space<vmem>>, vector<128x1xf32>
    %c0_2 = arith.constant 0 : index
    %c0_3 = arith.constant 0 : index
    %4 = vector.load %arg6[%c0_2, %c0_3] : memref<1x128xf32, #tpu.memory_space<vmem>>, vector<1x128xf32>
    %5 = vector.broadcast %3 : vector<128x1xf32> to vector<128x128xf32>
    %6 = vector.broadcast %4 : vector<1x128xf32> to vector<128x128xf32>
    %7 = arith.mulf %5, %6 : vector<128x128xf32>
    %c0_4 = arith.constant 0 : index
    %c0_5 = arith.constant 0 : index
    %8 = vector.load %arg3[%c0_4, %c0_5] : memref<128x128xf32, #tpu.memory_space<vmem>>, vector<128x128xf32>
    %c0_6 = arith.constant 0 : index
    %c0_7 = arith.constant 0 : index
    %9 = vector.load %arg4[%c0_6, %c0_7] : memref<128x128xf32, #tpu.memory_space<vmem>>, vector<128x128xf32>
    %10 = arith.mulf %9, %7 : vector<128x128xf32>
    %11 = arith.addf %8, %10 : vector<128x128xf32>
    %c0_8 = arith.constant 0 : index
    %c0_9 = arith.constant 0 : index
    %12 = vector.load %arg11[%c0_8, %c0_9] : memref<8x128xf32, #tpu.memory_space<vmem>>, vector<8x128xf32>
    %c0_10 = arith.constant 0 : index
    %c0_11 = arith.constant 0 : index
    %13 = vector.load %arg2[%c0_10, %c0_11] : memref<8x128xf32, #tpu.memory_space<vmem>>, vector<8x128xf32>
    %14 = arith.truncf %13 : vector<8x128xf32> to vector<8x128xbf16>
    %15 = arith.truncf %11 : vector<128x128xf32> to vector<128x128xbf16>
    %cst = arith.constant dense<0.000000e+00> : vector<8x128xf32>
    %16 = tpu.matmul %14, %15, %cst {dimension_numbers = #tpu.dot_dimension_numbers<[1], [1], [0], [0], [0, 0, 1, 0], [], []>} : vector<8x128xbf16>, vector<128x128xbf16>, vector<8x128xf32> -> vector<8x128xf32>
    %17 = arith.addf %12, %16 : vector<8x128xf32>
    %c0_12 = arith.constant 0 : index
    %c0_13 = arith.constant 0 : index
    %18 = vector.load %arg11[%c0_12, %c0_13] : memref<8x128xf32, #tpu.memory_space<vmem>>, vector<8x128xf32>
    tpu.vector_store %arg11[%c0_12, %c0_13], %17 {strides = array<i32>} : memref<8x128xf32, #tpu.memory_space<vmem>>, vector<8x128xf32>,
    %c0_i32_14 = arith.constant 0 : i32
    %19 = arith.cmpi eq, %arg1, %c0_i32_14 : i32
    %20 = arith.extui %19 : i1 to i32
    %c0_i32_15 = arith.constant 0 : i32
    %21 = arith.cmpi ne, %20, %c0_i32_15 : i32
    scf.if %21 {
      %c0_16 = arith.constant 0 : index
      %c0_17 = arith.constant 0 : index
      %22 = vector.load %arg7[%c0_16, %c0_17] : memref<1x128xf32, #tpu.memory_space<vmem>>, vector<1x128xf32>
      %c0_18 = arith.constant 0 : index
      %c0_19 = arith.constant 0 : index
      %23 = vector.load %arg8[%c0_18, %c0_19] : memref<1x128xf32, #tpu.memory_space<vmem>>, vector<1x128xf32>
      %c0_20 = arith.constant 0 : index
      %c0_21 = arith.constant 0 : index
      %24 = vector.load %arg9[%c0_20, %c0_21] : memref<1x128xf32, #tpu.memory_space<vmem>>, vector<1x128xf32>
      %25 = arith.mulf %23, %24 : vector<1x128xf32>
      %26 = arith.addf %22, %25 : vector<1x128xf32>
      %c0_22 = arith.constant 0 : index
      %c0_23 = arith.constant 0 : index
      %27 = vector.load %arg11[%c0_22, %c0_23] : memref<8x128xf32, #tpu.memory_space<vmem>>, vector<8x128xf32>
      %28 = vector.broadcast %26 : vector<1x128xf32> to vector<8x128xf32>
      %29 = arith.addf %27, %28 : vector<8x128xf32>
      %c0_24 = arith.constant 0 : index
      %c0_25 = arith.constant 0 : index
      %30 = vector.load %arg10[%c0_24, %c0_25] : memref<8x128xf32, #tpu.memory_space<vmem>>, vector<8x128xf32>
      tpu.vector_store %arg10[%c0_24, %c0_25], %29 {strides = array<i32>} : memref<8x128xf32, #tpu.memory_space<vmem>>, vector<8x128xf32>,
    } else {
    }
    return
  }
  func.func @transform_0(%arg0: i32, %arg1: i32) -> (i32, i32) {
    %c0_i32 = arith.constant 0 : i32
    %c0_i32_0 = arith.constant 0 : i32
    return %c0_i32, %arg1 : i32, i32
  }
  func.func @transform_1(%arg0: i32, %arg1: i32) -> (i32, i32) {
    %c0_i32 = arith.constant 0 : i32
    return %arg0, %arg1 : i32, i32
  }
  func.func @transform_2(%arg0: i32, %arg1: i32) -> (i32, i32) {
    %c0_i32 = arith.constant 0 : i32
    return %arg0, %arg1 : i32, i32
  }
  func.func @transform_3(%arg0: i32, %arg1: i32) -> (i32, i32) {
    %c0_i32 = arith.constant 0 : i32
    %c0_i32_0 = arith.constant 0 : i32
    return %arg0, %c0_i32 : i32, i32
  }
  func.func @transform_4(%arg0: i32, %arg1: i32) -> (i32, i32) {
    %c0_i32 = arith.constant 0 : i32
    %c0_i32_0 = arith.constant 0 : i32
    return %c0_i32, %arg1 : i32, i32
  }
  func.func @transform_5(%arg0: i32, %arg1: i32) -> (i32, i32) {
    %c0_i32 = arith.constant 0 : i32
    %c0_i32_0 = arith.constant 0 : i32
    return %c0_i32, %arg0 : i32, i32
  }
  func.func @transform_6(%arg0: i32, %arg1: i32) -> (i32, i32) {
    %c0_i32 = arith.constant 0 : i32
    %c0_i32_0 = arith.constant 0 : i32
    return %c0_i32, %arg0 : i32, i32
  }
  func.func @transform_7(%arg0: i32, %arg1: i32) -> (i32, i32) {
    %c0_i32 = arith.constant 0 : i32
    %c0_i32_0 = arith.constant 0 : i32
    return %c0_i32, %arg0 : i32, i32
  }
  func.func @transform_8(%arg0: i32, %arg1: i32) -> (i32, i32) {
    %c0_i32 = arith.constant 0 : i32
    %c0_i32_0 = arith.constant 0 : i32
    return %c0_i32, %arg0 : i32, i32
  }
}

</mosaic_0001>

<bundles_post_ra>
// kernel: noisy_dense_forward.1
= control target key start
LH: loop header
LB: loop body
LE: loop exit
PB: predicated region body
PF: predicated region fallthrough
CT: control target
= control target key end

     0   :  { %13 = vsyncpa [#allocation4], 0  ;;  %s866_s0 = inlined_call_operand.hbm [shape: f32[8,128], index: 0, kind: input, shape index: {}]   ;;  %s867_s1 = inlined_call_operand.hbm [shape: f32[128,128], index: 1, kind: input, shape index: {}]   ;;  %s868_s2 = inlined_call_operand.hbm [shape: f32[128,128], index: 2, kind: input, shape index: {}]   ;;  %s869_s3 = inlined_call_operand.hbm [shape: f32[128,1], index: 3, kind: input, shape index: {}]   ;;  %s870_s4 = inlined_call_operand.hbm [shape: f32[1,128], index: 4, kind: input, shape index: {}]   ;;  %s871_s5 = inlined_call_operand.hbm [shape: f32[1,128], index: 5, kind: input, shape index: {}]   ;;  %s872_s6 = inlined_call_operand.hbm [shape: f32[1,128], index: 6, kind: input, shape index: {}]   ;;  %s873_s7 = inlined_call_operand.hbm [shape: f32[1,128], index: 7, kind: input, shape index: {}]   ;;  %s874_s8 = inlined_call_operand.hbm [shape: f32[8,128], index: 8, kind: output, shape index: {}]  }
   0x1   :  { %14 = vsyncpa [#allocation7], 0 }
   0x2   :  { %15 = vsyncpa [#allocation10], 0 }
   0x3   :  { %16 = vsyncpa [#allocation13], 0 }
   0x4   :  { %17 = vsyncpa [#allocation16], 0 }
   0x5   :  { %18 = vsyncpa [#allocation5], 0  ;;  %s663_s27 = smov [#allocation6]   ;;  %s453_s9 = scalar_lea.hbm %s867_s1, 2048 }
   0x6   :  { %s34_s28 = sshll.u32 %s663_s27, 4  ;;  %p454_p0 = scmp.ne.s32.totalorder %s867_s1, %s453_s9  ;;  %s35_s28 = int_to_ptr.vmem [resolvable:$true] %s34_s28 }
   0x7   :  { %p457_p1 = scmp.lt.u32.totalorder %s453_s9, %s867_s1 }
   0x9   :  { %p459_p2 = pnand %p457_p1, %p454_p0 }
   0xb   :  { %462 = shalt.err (!%p459_p2)
}
   0xc   :  { %s463_s14 = scalar_lea.vmem %s35_s28, 2048  ;;  %p468_p4 = scmp.lt.s32.totalorder %s35_s28, %s35_s28 }
   0xd   :  { %p464_p3 = scmp.ne.s32.totalorder %s35_s28, %s463_s14  ;;  %p469_p5 = scmp.lt.s32.totalorder %s463_s14, %s463_s14 }
   0xf   :  { %p470_p6 = por %p469_p5, %p468_p4 }
  0x11   :  { %p471_p7 = pnand %p470_p6, %p464_p3 }
  0x13   :  { %474 = shalt.err (!%p471_p7)
}
  0x14   :  { %s664_s15 = smov 128   ;;  %s665_s16 = smov 8  }
  0x15   :  { %40 = dma.hbm_to_vmem [thread:$0]  %s867_s1, 2048, %s35_s28, [#allocation7], %s664_s15, %s664_s15, %s665_s16  }
  0x16   :  { %s666_s19 = smov [#allocation9]   ;;  %s667_s21 = smov [#allocation12]  }
  0x17   :  { %s58_s20 = sshll.u32 %s666_s19, 4  ;;  %s81_s22 = sshll.u32 %s667_s21, 4  ;;  %s59_s20 = int_to_ptr.vmem [resolvable:$true] %s58_s20  ;;  %s82_s22 = int_to_ptr.vmem [resolvable:$true] %s81_s22 }
  0x18   :  { %s475_s25 = scalar_lea.hbm %s869_s3, 2048 }
  0x19   :  { %p476_p8 = scmp.ne.s32.totalorder %s869_s3, %s475_s25  ;;  %p479_p9 = scmp.lt.u32.totalorder %s475_s25, %s869_s3 }
  0x1b   :  { %p481_p10 = pnand %p479_p9, %p476_p8 }
  0x1d   :  { %484 = shalt.err (!%p481_p10)
}
  0x1e   :  { %s485_s1 = scalar_lea.vmem %s59_s20, 2048  ;;  %p490_p12 = scmp.lt.s32.totalorder %s59_s20, %s59_s20 }
  0x1f   :  { %p486_p11 = scmp.ne.s32.totalorder %s59_s20, %s485_s1  ;;  %p491_p13 = scmp.lt.s32.totalorder %s485_s1, %s485_s1 }
  0x21   :  { %p492_p0 = por %p491_p13, %p490_p12 }
  0x23   :  { %p493_p1 = pnand %p492_p0, %p486_p11 }
  0x25   :  { %496 = shalt.err (!%p493_p1)
}
  0x26   :  { %64 = dma.hbm_to_vmem [thread:$0]  %s869_s3, 2048, %s59_s20, [#allocation10], %s664_s15, %s664_s15, %s665_s16  }
  0x27   :  { %s497_s12 = scalar_lea.hbm %s871_s5, 16 }
  0x28   :  { %p498_p2 = scmp.ne.s32.totalorder %s871_s5, %s497_s12  ;;  %p501_p3 = scmp.lt.u32.totalorder %s497_s12, %s871_s5 }
  0x2a   :  { %p503_p4 = pnand %p501_p3, %p498_p2 }
  0x2c   :  { %506 = shalt.err (!%p503_p4)
}
  0x2d   :  { %s507_s19 = scalar_lea.vmem %s82_s22, 16  ;;  %s511_s21 = scalar_lea.vmem %s82_s22, 32 }
  0x2e   :  { %p508_p5 = scmp.ne.s32.totalorder %s82_s22, %s507_s19  ;;  %p512_p6 = scmp.lt.s32.totalorder %s82_s22, %s82_s22 }
  0x2f   :  { %p513_p7 = scmp.lt.s32.totalorder %s511_s21, %s507_s19 }
  0x31   :  { %p514_p8 = por %p513_p7, %p512_p6 }
  0x33   :  { %p515_p9 = pnand %p514_p8, %p508_p5 }
  0x35   :  { %518 = shalt.err (!%p515_p9)
}
  0x36   :  { %84 = dma.hbm_to_vmem [thread:$0]  %s871_s5, 16, %s82_s22, [#allocation13]  }
  0x37   :  { %s668_s23 = smov [#allocation3]   ;;  %s669_s25 = smov [#allocation8]  }
  0x38   :  { %s25_s24 = sshll.u32 %s668_s23, 4  ;;  %s46_s26 = sshll.u32 %s669_s25, 4  ;;  %s26_s24 = int_to_ptr.vmem [resolvable:$true] %s25_s24  ;;  %s47_s26 = int_to_ptr.vmem [resolvable:$true] %s46_s26 }
  0x39   :  { %s519_s30 = scalar_lea.hbm %s866_s0, 128 }
  0x3a   :  { %p520_p10 = scmp.ne.s32.totalorder %s866_s0, %s519_s30  ;;  %p523_p11 = scmp.lt.u32.totalorder %s519_s30, %s866_s0 }
  0x3c   :  { %p525_p12 = pnand %p523_p11, %p520_p10 }
  0x3e   :  { %528 = shalt.err (!%p525_p12)
}
  0x3f   :  { %s529_s5 = scalar_lea.vmem %s26_s24, 128  ;;  %p534_p0 = scmp.lt.s32.totalorder %s26_s24, %s26_s24 }
  0x40   :  { %p530_p13 = scmp.ne.s32.totalorder %s26_s24, %s529_s5  ;;  %p535_p1 = scmp.lt.s32.totalorder %s529_s5, %s529_s5 }
  0x42   :  { %p536_p2 = por %p535_p1, %p534_p0 }
  0x44   :  { %p537_p3 = pnand %p536_p2, %p530_p13 }
  0x46   :  { %540 = shalt.err (!%p537_p3)
}
  0x47   :  { %28 = dma.hbm_to_vmem [thread:$0]  %s866_s0, 128, %s26_s24, [#allocation4]  }
  0x48   :  { %s541_s14 = scalar_lea.hbm %s868_s2, 2048 }
  0x49   :  { %p542_p4 = scmp.ne.s32.totalorder %s868_s2, %s541_s14  ;;  %p545_p5 = scmp.lt.u32.totalorder %s541_s14, %s868_s2 }
  0x4b   :  { %p547_p6 = pnand %p545_p5, %p542_p4 }
  0x4d   :  { %550 = shalt.err (!%p547_p6)
}
  0x4e   :  { %s551_s3 = scalar_lea.vmem %s47_s26, 2048  ;;  %p556_p8 = scmp.lt.s32.totalorder %s47_s26, %s47_s26 }
  0x4f   :  { %p552_p7 = scmp.ne.s32.totalorder %s47_s26, %s551_s3  ;;  %p557_p9 = scmp.lt.s32.totalorder %s551_s3, %s551_s3 }
  0x51   :  { %p558_p10 = por %p557_p9, %p556_p8 }
  0x53   :  { %p559_p11 = pnand %p558_p10, %p552_p7 }
  0x55   :  { %562 = shalt.err (!%p559_p11)
}
  0x56   :  { %52 = dma.hbm_to_vmem [thread:$0]  %s868_s2, 2048, %s47_s26, [#allocation7], %s664_s15, %s664_s15, %s665_s16  }
  0x57   :  { %s670_s23 = smov [#allocation11]   ;;  %s671_s25 = smov [#allocation14]  }
  0x58   :  { %s71_s24 = sshll.u32 %s670_s23, 4  ;;  %s91_s27 = sshll.u32 %s671_s25, 4  ;;  %s72_s24 = int_to_ptr.vmem [resolvable:$true] %s71_s24  ;;  %s92_s27 = int_to_ptr.vmem [resolvable:$true] %s91_s27 }
  0x59   :  { %s563_s1 = scalar_lea.hbm %s870_s4, 16 }
  0x5a   :  { %p564_p12 = scmp.ne.s32.totalorder %s870_s4, %s563_s1  ;;  %p567_p13 = scmp.lt.u32.totalorder %s563_s1, %s870_s4 }
  0x5c   :  { %p569_p0 = pnand %p567_p13, %p564_p12 }
  0x5e   :  { %572 = shalt.err (!%p569_p0)
}
  0x5f   :  { %s573_s2 = scalar_lea.vmem %s72_s24, 16  ;;  %s577_s15 = scalar_lea.vmem %s72_s24, 32 }
  0x60   :  { %p574_p1 = scmp.ne.s32.totalorder %s72_s24, %s573_s2  ;;  %p578_p2 = scmp.lt.s32.totalorder %s72_s24, %s72_s24 }
  0x61   :  { %p579_p3 = scmp.lt.s32.totalorder %s577_s15, %s573_s2 }
  0x63   :  { %p580_p4 = por %p579_p3, %p578_p2 }
  0x65   :  { %p581_p5 = pnand %p580_p4, %p574_p1 }
  0x67   :  { %584 = shalt.err (!%p581_p5)
}
  0x68   :  { %74 = dma.hbm_to_vmem [thread:$0]  %s870_s4, 16, %s72_s24, [#allocation10]  }
  0x69   :  { %s585_s12 = scalar_lea.hbm %s872_s6, 16 }
  0x6a   :  { %p586_p6 = scmp.ne.s32.totalorder %s872_s6, %s585_s12  ;;  %p589_p7 = scmp.lt.u32.totalorder %s585_s12, %s872_s6 }
  0x6c   :  { %p591_p8 = pnand %p589_p7, %p586_p6 }
  0x6e   :  { %594 = shalt.err (!%p591_p8)
}
  0x6f   :  { %s595_s19 = scalar_lea.vmem %s92_s27, 16  ;;  %s599_s21 = scalar_lea.vmem %s92_s27, 32 }
  0x70   :  { %p596_p9 = scmp.ne.s32.totalorder %s92_s27, %s595_s19  ;;  %p600_p10 = scmp.lt.s32.totalorder %s92_s27, %s92_s27 }
  0x71   :  { %p601_p11 = scmp.lt.s32.totalorder %s599_s21, %s595_s19 }
  0x73   :  { %p602_p12 = por %p601_p11, %p600_p10 }
  0x75   :  { %p603_p13 = pnand %p602_p12, %p596_p9 }
  0x77   :  { %606 = shalt.err (!%p603_p13)
}
  0x78   :  { %94 = dma.hbm_to_vmem [thread:$0]  %s872_s6, 16, %s92_s27, [#allocation13]  }
  0x79   :  { %s672_s0 = smov [#allocation15]   ;;  %s607_s25 = scalar_lea.hbm %s873_s7, 16 }
  0x7a   :  { %s101_s20 = sshll.u32 %s672_s0, 4  ;;  %p608_p0 = scmp.ne.s32.totalorder %s873_s7, %s607_s25  ;;  %s102_s20 = int_to_ptr.vmem [resolvable:$true] %s101_s20 }
  0x7b   :  { %p611_p1 = scmp.lt.u32.totalorder %s607_s25, %s873_s7 }
  0x7d   :  { %p613_p2 = pnand %p611_p1, %p608_p0 }
  0x7f   :  { %616 = shalt.err (!%p613_p2)
}
  0x80   :  { %s617_s9 = scalar_lea.vmem %s102_s20, 16  ;;  %s621_s6 = scalar_lea.vmem %s102_s20, 32 }
  0x81   :  { %p618_p3 = scmp.ne.s32.totalorder %s102_s20, %s617_s9  ;;  %p622_p4 = scmp.lt.s32.totalorder %s102_s20, %s102_s20 }
  0x82   :  { %p623_p5 = scmp.lt.s32.totalorder %s621_s6, %s617_s9 }
  0x84   :  { %p624_p6 = por %p623_p5, %p622_p4 }
  0x86   :  { %p625_p7 = pnand %p624_p6, %p618_p3 }
  0x88   :  { %628 = shalt.err (!%p625_p7)
}
  0x89   :  { %104 = dma.hbm_to_vmem [thread:$0]  %s873_s7, 16, %s102_s20, [#allocation16]  }
  0x8a   :  { %651 = dma.done.wait [#allocation4], 128  }
  0x8b   :  { %652 = vsyncadd [#allocation4], 4294967168 }
  0x8c   :  { %653 = dma.done.wait [#allocation7], 4096  }
  0x8d   :  { %654 = vsyncadd [#allocation7], 4294963200 }
  0x8e   :  { %655 = dma.done.wait [#allocation10], 2064  }
  0x8f   :  { %656 = vsyncadd [#allocation10], 4294965232 }
  0x90   :  { %657 = dma.done.wait [#allocation13], 32  }
  0x91   :  { %658 = vsyncadd [#allocation13], 4294967264 }
  0x92   :  { %659 = dma.done.wait [#allocation16], 16  }
  0x93   :  { %660 = vsyncadd [#allocation16], 4294967280  ;;  %v673_v0 = vmov 0   ;;  %v137_v1 = vld [vmem:[#allocation9 + $0x10] sm:$0xff]  ;;  %v135_v2 = vld [vmem:[#allocation9] sm:$0xff]  ;;  %v674_v9 = vmov 0.0  }
  0x94   :  { %452 = vset.pattern.permute.xlu1 %v673_v0  ;;  %451 = vset.pattern.permute.xlu0 %v673_v0  ;;  %v138_v3 = vld [vmem:[#allocation9 + $0x18] sm:$0xff]  ;;  %v136_v4 = vld [vmem:[#allocation9 + $0x8] sm:$0xff]  ;;  %v139_v6 = vld [vmem:[#allocation9 + $0x20] sm:$0xff]  ;;  %vm675_vm0 = vmmov 0   ;;  %s676_s7 = smov [#allocation17]  }
  0x95   :  { %164 = vperm.xlu1 %452, %v137_v1   ;;  %154 = vperm.xlu0 %451, %v135_v2   ;;  %v140_v5 = vld [vmem:[#allocation9 + $0x28] sm:$0xff]  ;;  %v142_v7 = vld [vmem:[#allocation9 + $0x38] sm:$0xff]  ;;  %v141_v8 = vld [vmem:[#allocation9 + $0x30] sm:$0xff]  ;;  %s394_s5 = sshll.u32 %s676_s7, 4  ;;  %s395_s5 = int_to_ptr.vmem [resolvable:$true] %s394_s5 }
  0x96   :  { %417 = vmatprep.subr.bf16.mxu0 %v674_v9  ;;  %v144_v10 = vld [vmem:[#allocation9 + $0x48] sm:$0xff]  ;;  %v143_v11 = vld [vmem:[#allocation9 + $0x40] sm:$0xff]  ;;  %v146_v12 = vld [vmem:[#allocation9 + $0x58] sm:$0xff]  ;;  %433 = vmatprep.mubr.msk.bf16.mxu0 %vm675_vm0, %v674_v9  ;;  %s629_s2 = scalar_lea.vmem %s395_s5, 128  ;;  %p634_p9 = scmp.lt.s32.totalorder %s395_s5, %s395_s5 }
  0x97   :  { %v145_v13 = vld [vmem:[#allocation9 + $0x50] sm:$0xff]  ;;  %v148_v14 = vld [vmem:[#allocation9 + $0x68] sm:$0xff]  ;;  %v147_v15 = vld [vmem:[#allocation9 + $0x60] sm:$0xff]  ;;  %p630_p8 = scmp.ne.s32.totalorder %s395_s5, %s629_s2  ;;  %p635_p10 = scmp.lt.s32.totalorder %s629_s2, %s629_s2 }
  0x98   :  { %v150_v16 = vld [vmem:[#allocation9 + $0x78] sm:$0xff]  ;;  %v149_v17 = vld [vmem:[#allocation9 + $0x70] sm:$0xff]  ;;  %v829_v18 = vld [vmem:[#allocation11] ss:$0 sm:$0xff] }
  0x99   :  { %169 = vperm.xlu1 %452, %v138_v3   ;;  %159 = vperm.xlu0 %451, %v136_v4   ;;  %v270_v22 = vld [vmem:[#allocation8] sm:$0xff]  ;;  %v271_v23 = vld [vmem:[#allocation8 + $0x8] sm:$0xff]  ;;  %v272_v33 = vld [vmem:[#allocation8 + $0x10] sm:$0xff]  ;;  %p636_p11 = por %p635_p10, %p634_p9 }
  0x9a   :  { %v254_v28 = vld [vmem:[#allocation6] sm:$0xff]  ;;  %v255_v29 = vld [vmem:[#allocation6 + $0x8] sm:$0xff]  ;;  %v273_v34 = vld [vmem:[#allocation8 + $0x18] sm:$0xff] }
  0x9b   :  { %v256_v40 = vld [vmem:[#allocation6 + $0x10] sm:$0xff]  ;;  %v257_v41 = vld [vmem:[#allocation6 + $0x18] sm:$0xff]  ;;  %v275_v48 = vld [vmem:[#allocation8 + $0x28] sm:$0xff]  ;;  %p637_p12 = pnand %p636_p11, %p630_p8 }
  0x9c   :  { %v274_v49 = vld [vmem:[#allocation8 + $0x20] sm:$0xff]  ;;  %v259_v53 = vld [vmem:[#allocation6 + $0x28] sm:$0xff]  ;;  %v277_v61 = vld [vmem:[#allocation8 + $0x38] sm:$0xff] }
  0x9d   :  { %179 = vperm.xlu1 %452, %v140_v5   ;;  %174 = vperm.xlu0 %451, %v139_v6   ;;  %v258_v54 = vld [vmem:[#allocation6 + $0x20] sm:$0xff]  ;;  %v276_v62 = vld [vmem:[#allocation8 + $0x30] sm:$0xff]  ;;  %v261_v2 = vld [vmem:[#allocation6 + $0x38] sm:$0xff] }
  0x9e   :  { %v260_v3 = vld [vmem:[#allocation6 + $0x30] sm:$0xff] }
  0xa1   :  { %189 = vperm.xlu1 %452, %v142_v7   ;;  %184 = vperm.xlu0 %451, %v141_v8  }
  0xa5   :  { %199 = vperm.xlu1 %452, %v144_v10   ;;  %194 = vperm.xlu0 %451, %v143_v11   ;;  %v279_v11 = vld [vmem:[#allocation8 + $0x48] sm:$0xff] }
  0xa9   :  { %209 = vperm.xlu1 %452, %v146_v12   ;;  %204 = vperm.xlu0 %451, %v145_v13   ;;  %v278_v12 = vld [vmem:[#allocation8 + $0x40] sm:$0xff] }
  0xad   :  { %219 = vperm.xlu1 %452, %v148_v14   ;;  %214 = vperm.xlu0 %451, %v147_v15  }
  0xb1   :  { %229 = vperm.xlu1 %452, %v150_v16   ;;  %224 = vperm.xlu0 %451, %v149_v17   ;;  %v263_v16 = vld [vmem:[#allocation6 + $0x48] sm:$0xff]  ;;  %v262_v17 = vld [vmem:[#allocation6 + $0x40] sm:$0xff] }
 0x114   :  { %v165_v19 = vpop.permute.xlu1 %164  ;;  %v155_v20 = vpop.permute.xlu0 %154 }
 0x115   :  { %v238_v21 = vmul.f32 %v829_v18, %v155_v20  ;;  %v240_v30 = vmul.f32 %v829_v18, %v165_v19 }
 0x117   :  { %v286_v25 = vmul.f32 %v270_v22, %v238_v21  ;;  %v288_v37 = vmul.f32 %v272_v33, %v240_v30  ;;  %v265_v30 = vld [vmem:[#allocation6 + $0x58] sm:$0xff] }
 0x118   :  { %v160_v24 = vpop.permute.xlu0 %159  ;;  %v170_v27 = vpop.permute.xlu1 %169 }
 0x119   :  { %v239_v26 = vmul.f32 %v829_v18, %v160_v24  ;;  %v241_v31 = vmul.f32 %v829_v18, %v170_v27  ;;  %v302_v35 = vadd.f32 %v286_v25, %v254_v28  ;;  %v304_v44 = vadd.f32 %v288_v37, %v256_v40  ;;  %v281_v25 = vld [vmem:[#allocation8 + $0x58] sm:$0xff] }
 0x11b   :  { %v287_v32 = vmul.f32 %v271_v23, %v239_v26  ;;  %v289_v38 = vmul.f32 %v273_v34, %v241_v31  ;;  %v280_v26 = vld [vmem:[#allocation8 + $0x50] sm:$0xff] }
 0x11c   :  { %v180_v42 = vpop.permute.xlu1 %179  ;;  %v175_v43 = vpop.permute.xlu0 %174  ;;  %v264_v31 = vld [vmem:[#allocation6 + $0x50] sm:$0xff] }
 0x11d   :  { %v303_v36 = vadd.f32 %v287_v32, %v255_v29  ;;  %v305_v45 = vadd.f32 %v289_v38, %v257_v41  ;;  %v243_v46 = vmul.f32 %v829_v18, %v180_v42  ;;  %v242_v47 = vmul.f32 %v829_v18, %v175_v43  ;;  %v283_v38 = vld [vmem:[#allocation8 + $0x68] sm:$0xff] }
 0x11e   :  { %v267_v43 = vld [vmem:[#allocation6 + $0x68] sm:$0xff] }
 0x11f   :  { %v321_v39 = vpack.c.bf16 %v303_v36, %v302_v35  ;;  %v291_v50 = vmul.f32 %v275_v48, %v243_v46  ;;  %v290_v51 = vmul.f32 %v274_v49, %v242_v47  ;;  %v322_v52 = vpack.c.bf16 %v305_v45, %v304_v44  ;;  %v266_v44 = vld [vmem:[#allocation6 + $0x60] sm:$0xff] }
 0x120   :  { %v190_v55 = vpop.permute.xlu1 %189  ;;  %v185_v56 = vpop.permute.xlu0 %184 }
 0x121   :  { %418 = vmatpush3.bf16.xpose.msra.mxu0 %v321_v39  ;;  %v307_v57 = vadd.f32 %v291_v50, %v259_v53  ;;  %v306_v58 = vadd.f32 %v290_v51, %v258_v54  ;;  %v245_v59 = vmul.f32 %v829_v18, %v190_v55  ;;  %v244_v60 = vmul.f32 %v829_v18, %v185_v56  ;;  %v282_v39 = vld [vmem:[#allocation8 + $0x60] sm:$0xff]  ;;  %v285_v51 = vld [vmem:[#allocation8 + $0x78] sm:$0xff] }
 0x122   :  { %419 = vmatprep.subr.bf16.mxu0 %v674_v9  ;;  %v269_v56 = vld [vmem:[#allocation6 + $0x78] sm:$0xff] }
 0x123   :  { %v293_v63 = vmul.f32 %v277_v61, %v245_v59  ;;  %v292_v0 = vmul.f32 %v276_v62, %v244_v60  ;;  %v323_v1 = vpack.c.bf16 %v307_v57, %v306_v58  ;;  %v268_v57 = vld [vmem:[#allocation6 + $0x70] sm:$0xff]  ;;  %v319_v61 = vld [vmem:[#allocation3] sm:$0xff] }
 0x124   :  { %v200_v4 = vpop.permute.xlu1 %199  ;;  %v195_v5 = vpop.permute.xlu0 %194  ;;  %v320_v62 = vpack.c.bf16 %v319_v61, %v319_v61 }
 0x125   :  { %v309_v6 = vadd.f32 %v293_v63, %v261_v2  ;;  %v308_v7 = vadd.f32 %v292_v0, %v260_v3  ;;  %v247_v8 = vmul.f32 %v829_v18, %v200_v4  ;;  %v246_v10 = vmul.f32 %v829_v18, %v195_v5  ;;  %v375_v0 = vld [vmem:[#allocation14] sm:$0x1]  ;;  %v374_v3 = vld [vmem:[#allocation12] sm:$0x1] }
 0x126   :  { %v381_v63 = vlaneseq }
 0x127   :  { %v295_v13 = vmul.f32 %v279_v11, %v247_v8  ;;  %v294_v14 = vmul.f32 %v278_v12, %v246_v10  ;;  %v324_v15 = vpack.c.bf16 %v309_v6, %v308_v7 }
 0x128   :  { %v210_v19 = vpop.permute.xlu1 %209  ;;  %v205_v20 = vpop.permute.xlu0 %204  ;;  %v382_v2 = vshrl.u32 %v381_v63, 7 }
 0x129   :  { %420 = vmatpush3.bf16.xpose.msra.mxu0 %v322_v52  ;;  %v311_v21 = vadd.f32 %v295_v13, %v263_v16  ;;  %v310_v22 = vadd.f32 %v294_v14, %v262_v17  ;;  %v249_v23 = vmul.f32 %v829_v18, %v210_v19  ;;  %v248_v24 = vmul.f32 %v829_v18, %v205_v20  ;;  %v284_v52 = vld [vmem:[#allocation8 + $0x70] sm:$0xff] }
 0x12a   :  { %421 = vmatprep.subr.bf16.mxu0 %v674_v9  ;;  %v383_v5 = vsub.s32 0, %v382_v2 }
 0x12b   :  { %v297_v27 = vmul.f32 %v281_v25, %v249_v23  ;;  %v296_v28 = vmul.f32 %v280_v26, %v248_v24  ;;  %v325_v29 = vpack.c.bf16 %v311_v21, %v310_v22 }
 0x12c   :  { %v220_v32 = vpop.permute.xlu1 %219  ;;  %v215_v33 = vpop.permute.xlu0 %214 }
 0x12d   :  { %v313_v34 = vadd.f32 %v297_v27, %v265_v30  ;;  %v312_v35 = vadd.f32 %v296_v28, %v264_v31  ;;  %v251_v36 = vmul.f32 %v829_v18, %v220_v32  ;;  %v250_v37 = vmul.f32 %v829_v18, %v215_v33 }
 0x12f   :  { %v299_v40 = vmul.f32 %v283_v38, %v251_v36  ;;  %v298_v41 = vmul.f32 %v282_v39, %v250_v37  ;;  %v326_v42 = vpack.c.bf16 %v313_v34, %v312_v35 }
 0x130   :  { %v230_v45 = vpop.permute.xlu1 %229  ;;  %v225_v46 = vpop.permute.xlu0 %224 }
 0x131   :  { %422 = vmatpush3.bf16.xpose.msra.mxu0 %v323_v1  ;;  %v315_v47 = vadd.f32 %v299_v40, %v267_v43  ;;  %v314_v48 = vadd.f32 %v298_v41, %v266_v44  ;;  %v253_v49 = vmul.f32 %v829_v18, %v230_v45  ;;  %v252_v50 = vmul.f32 %v829_v18, %v225_v46  ;;  %v376_v18 = vld [vmem:[#allocation15] sm:$0x1] }
 0x132   :  { %423 = vmatprep.subr.bf16.mxu0 %v674_v9  ;;  %v377_v1 = vmul.f32 %v376_v18, %v375_v0 }
 0x133   :  { %v301_v53 = vmul.f32 %v285_v51, %v253_v49  ;;  %v300_v54 = vmul.f32 %v284_v52, %v252_v50  ;;  %v327_v55 = vpack.c.bf16 %v315_v47, %v314_v48 }
 0x134   :  { %v378_v4 = vadd.f32 %v377_v1, %v374_v3 }
 0x135   :  { %v317_v58 = vadd.f32 %v301_v53, %v269_v56  ;;  %v316_v59 = vadd.f32 %v300_v54, %v268_v57 }
 0x136   :  { %v384_v6 = vrot.slane %v378_v4, %v383_v5 }
 0x137   :  { %v328_v60 = vpack.c.bf16 %v317_v58, %v316_v59 }
 0x139   :  { %424 = vmatpush3.bf16.xpose.msra.mxu0 %v324_v15 }
 0x13a   :  { %425 = vmatprep.subr.bf16.mxu0 %v674_v9 }
 0x141   :  { %426 = vmatpush3.bf16.xpose.msra.mxu0 %v325_v29 }
 0x142   :  { %427 = vmatprep.subr.bf16.mxu0 %v674_v9 }
 0x149   :  { %428 = vmatpush3.bf16.xpose.msra.mxu0 %v326_v42 }
 0x14a   :  { %429 = vmatprep.subr.bf16.mxu0 %v674_v9 }
 0x151   :  { %430 = vmatpush3.bf16.xpose.msra.mxu0 %v327_v55 }
 0x152   :  { %431 = vmatprep.subr.bf16.mxu0 %v674_v9 }
 0x159   :  { %432 = vmatpush3.bf16.xpose.msra.mxu0 %v328_v60 }
 0x160   :  { %434 = vmatmul.mubr.bf16.vlgmr.msra.gmra.mrb[0].mxu0 %v320_v62 }
 0x233   :  { %v363_v7 = vpop.f32.mrb[0].mxu0 }
 0x234   :  { %v386_v9 = vadd.f32 %v384_v6, %v363_v7  ;;  %v435_v8 = vpop.f32.mrb[1].mxu0 }
 0x235   :  { %v366_v10 = vpop.f32.mrb[2].mxu0 }
 0x236   :  { %387 = vst [vmem:[#allocation17] sm:$0xff] %v386_v9  ;;  %v436_v11 = vpop.f32.mrb[3].mxu0 }
 0x237   :  { %640 = shalt.err (!%p637_p12)
}
 0x238   :  { %s641_s26 = scalar_lea.hbm %s874_s8, 128 }
 0x239   :  { %p642_p13 = scmp.ne.s32.totalorder %s874_s8, %s641_s26  ;;  %p645_p0 = scmp.lt.u32.totalorder %s641_s26, %s874_s8 }
 0x23b   :  { %p647_p1 = pnand %p645_p0, %p642_p13 }
 0x23d   :  { %650 = shalt.err (!%p647_p1)
}
 0x23e   :  { %397 = dma.vmem_to_hbm [thread:$0]  %s395_s5, 128, %s874_s8, [#allocation5]  }
 0x23f   :  { %661 = dma.done.wait [#allocation5], 128  }
 0x240   :  { %662 = vsyncadd [#allocation5], 4294967168 }
 0x241   :  { %401 = vsyncpa [#allocation4], 1 }
 0x242   :  { %402 = vsyncpa [#allocation7], 1 }
 0x243   :  { %403 = vsyncpa [#allocation10], 1 }
 0x244   :  { %404 = vsyncpa [#allocation13], 1 }
 0x245   :  { %405 = vsyncpa [#allocation16], 1 }
 0x246   :  { %406 = vsyncpa [#allocation5], 1 }

</bundles_post_ra>
